<compile_context>
chip_gen: v6e
topology: v6e:2x2x1
jax: 0.10.0
libtpu: 0.0.40
codegen_flags: <defaults>
</compile_context>

<pallas_src>
import functools

import jax
import jax.numpy as jnp
from jax.experimental import pallas as pl
from jax.experimental.pallas import tpu as pltpu

# Label value that can never equal a real (non-negative) class label.
_SENTINEL = int(jnp.iinfo(jnp.int32).min)


def _round_up(x, m):
    return ((x + m - 1) // m) * m


# --------------------------------------------------------------------------- #
# Kernels
# --------------------------------------------------------------------------- #

def _normalize_kernel(inv_sqrt_t, f_ref, out_ref):
    """Row-normalize a (TM, D) tile, fold 1/sqrt(T), emit bf16 for the MXU."""
    f = f_ref[...].astype(jnp.float32)                        # only cast site
    ssq = jnp.sum(f * f, axis=1, keepdims=True)               # (TM, 1)
    # clamp per-row norm at 1e-8 (F.cosine_similarity clamps the per-pair
    # product of norms at 1e-8; differences only for norms <= ~1e-8).
    inv = jax.lax.rsqrt(jnp.maximum(ssq, 1e-16))              # (TM, 1)
    out_ref[...] = (f * (inv * inv_sqrt_t)).astype(jnp.bfloat16)


def _loss_rows_kernel(inv_t, tm, f_all_ref, lab_tile_ref, lab_all_ref, out_ref):
    """Per-row loss contribution (1/T - log(denominator)) for one row tile.

    f_all_ref is the full pre-normalized / pre-scaled matrix, resident in VMEM
    (constant block index); the current row tile is sliced out of it so the
    feature matrix is DMA'd from HBM only once.
    """
    row0 = pl.multiple_of(pl.program_id(0) * tm, tm)
    f_tile = f_all_ref[pl.ds(row0, tm), :]                    # (TM, D) bf16

    # sim = f_tile @ f_all.T ; bf16 operands, f32 accumulation on the MXU.
    # Inputs carry 1/sqrt(T) each, so this IS cosine_similarity / T.
    sim = jax.lax.dot_general(
        f_tile, f_all_ref[...],
        dimension_numbers=(((1,), (1,)), ((), ())),
        preferred_element_type=jnp.float32)                   # (TM, N) f32

    mask = lab_tile_ref[...] == lab_all_ref[...]              # (TM, N) bool
    numerator = jnp.where(mask, jnp.exp(sim), 0.0)            # EUP exp + select
    denom = jnp.sum(numerator, axis=1, keepdims=True)         # (TM, 1)

    # Rows padded with the sentinel label contribute nothing to the loss.
    valid = lab_tile_ref[...] != _SENTINEL                    # (TM, 1) bool
    denom_safe = jnp.where(valid, denom, 1.0)
    # diag term: sim[i,i] == 1/T after row normalization (exact for any row
    # with nonzero norm), so log_prob.diag() = 1/T - log(denom_i).
    out_ref[...] = jnp.where(valid, inv_t - jnp.log(denom_safe), 0.0)


# --------------------------------------------------------------------------- #
# Wrappers
# --------------------------------------------------------------------------- #

def contrastive_loss_pallas(features, labels, temperature=0.07, row_tile=256):
    """Contrastive loss over features/labels; sentinel-labeled rows ignored."""
    n, d = features.shape
    labels = labels.astype(jnp.int32)

    # Row tile: multiple of 8, capped at 256 so the working set fits v7x's
    # 64 MiB VMEM; pad N to a multiple of the tile with inert rows.
    tm = min(int(row_tile), _round_up(n, 8))
    n_pad = _round_up(n, tm)
    if n_pad > n:
        features = jnp.concatenate(
            [features, jnp.zeros((n_pad - n, d), features.dtype)], axis=0)
        labels = jnp.concatenate(
            [labels, jnp.full((n_pad - n,), _SENTINEL, jnp.int32)], axis=0)
    n_tiles = n_pad // tm

    # Stage 1: normalize + fold 1/sqrt(T), bf16 output for the MXU.
    f_hat = pl.pallas_call(
        functools.partial(_normalize_kernel, float(1.0 / (temperature ** 0.5))),
        out_shape=jax.ShapeDtypeStruct((n_pad, d), jnp.bfloat16),
        grid=(n_tiles,),
        in_specs=[pl.BlockSpec((tm, d), lambda i: (i, 0))],
        out_specs=pl.BlockSpec((tm, d), lambda i: (i, 0)),
        compiler_params=pltpu.CompilerParams(
            dimension_semantics=("parallel",)),
    )(features)

    lab_col = labels.reshape(n_pad, 1)
    lab_row = labels.reshape(1, n_pad)

    # Stage 2: row-tiled similarity + masked softmax denominator.
    per_row = pl.pallas_call(
        functools.partial(_loss_rows_kernel, float(1.0 / temperature), tm),
        out_shape=jax.ShapeDtypeStruct((n_pad, 1), jnp.float32),
        grid=(n_tiles,),
        in_specs=[
            pl.BlockSpec((n_pad, d), lambda i: (0, 0)),   # full f_hat, resident
            pl.BlockSpec((tm, 1), lambda i: (i, 0)),      # row-tile labels
            pl.BlockSpec((1, n_pad), lambda i: (0, 0)),   # all labels (row vec)
        ],
        out_specs=pl.BlockSpec((tm, 1), lambda i: (i, 0)),
        compiler_params=pltpu.CompilerParams(
            dimension_semantics=("parallel",),
            vmem_limit_bytes=48 * 1024 * 1024),
    )(f_hat, lab_col, lab_row)

    # Tiny O(N) finalize: loss = -mean over valid rows of (1/T - log(denom)).
    n_valid = jnp.sum((labels != _SENTINEL).astype(jnp.float32))
    return -jnp.sum(per_row) / n_valid


def custom_contrastive_loss(features, labels, dropout_key, temperature=0.07):
    """Mirrors CustomContrastiveLoss.forward with static (padded) shapes.

    Rows with label == 2 are gathered (twice), F.dropout(p=0.5) is applied and
    they are appended.  The augmentation block always has 2*B slots; unused
    slots get zero features and a sentinel label so they match nothing and are
    excluded from the loss -> one compiled kernel for every batch composition.
    """
    b, d = features.shape
    labels = labels.astype(jnp.int32)

    is_two = labels == 2
    count = jnp.sum(is_two.astype(jnp.int32))
    idx = jnp.nonzero(is_two, size=b, fill_value=0)[0]        # (B,) static
    half_valid = jnp.arange(b, dtype=jnp.int32) < count       # (B,) bool

    aug_idx = jnp.concatenate([idx, idx], axis=0)             # (2B,)
    aug_valid = jnp.concatenate([half_valid, half_valid], axis=0)

    gathered = features[aug_idx]                              # (2B, D)
    # F.dropout(p=0.5, training=True): drop w.p. 0.5, scale kept by 2.
    keep = jax.random.bernoulli(dropout_key, 0.5, gathered.shape)
    perturbed = jnp.where(keep, gathered * 2.0, 0.0)
    perturbed = jnp.where(aug_valid[:, None], perturbed, 0.0)
    aug_labels = jnp.where(aug_valid, labels[aug_idx], _SENTINEL)

    feats_all = jnp.concatenate(
        [features, perturbed.astype(features.dtype)], axis=0)   # (3B, D)
    labels_all = jnp.concatenate([labels, aug_labels], axis=0)  # (3B,)
    return contrastive_loss_pallas(feats_all, labels_all, temperature)


if __name__ == "__main__":
    key = jax.random.PRNGKey(0)
    kf, kl, kd = jax.random.split(key, 3)

    B, D = 8, 32
    features = jax.random.normal(kf, (B, D), dtype=jnp.float32)
    # labels in {0, 1, 2}; class "2" triggers the augmentation branch.
    labels = jax.random.randint(kl, (B,), 0, 3, dtype=jnp.int32)

    loss_fn = jax.jit(functools.partial(custom_contrastive_loss,
                                        temperature=0.07))
    loss = loss_fn(features, labels, kd)
    jax.block_until_ready(loss)
    print("KERNEL_OK")
</pallas_src>

<mosaic_0001>
module attributes {stable_mosaic.version = 11 : i64} {
  func.func private @main(%arg0: i32) attributes {dimension_semantics = [#tpu.dimension_semantics<core_parallel>], iteration_bounds = array<i64: 2>, tpu.core_type = #tpu.core_type<sc_scalar_subcore>, window_params = []} {
    return
  }
}

module attributes {stable_mosaic.version = 11 : i64} {
  func.func private @main(%arg0: i32) attributes {dimension_semantics = [#tpu.dimension_semantics<core_parallel>], iteration_bounds = array<i64: 2>, tpu.core_type = #tpu.core_type<sc_scalar_subcore>, window_params = []} {
    return
  }
}

module attributes {stable_mosaic.version = 11 : i64} {
  func.func @_normalize_kernel(%arg0: i32, %arg1: memref<24x32xf32, #tpu.memory_space<vmem>>, %arg2: memref<24x32xbf16, #tpu.memory_space<vmem>>) attributes {dimension_semantics = [#tpu.dimension_semantics<parallel>], iteration_bounds = array<i64: 1>, scalar_prefetch = 0 : i64, scratch_operands = 0 : i64, tpu.core_type = #tpu.core_type<tc>, window_params = [{transform_indices = @transform_0, window_bounds = array<i64: 24, 32>}, {transform_indices = @transform_1, window_bounds = array<i64: 24, 32>}]} {
    %c0 = arith.constant 0 : index
    %c0_0 = arith.constant 0 : index
    %0 = vector.load %arg1[%c0, %c0_0] : memref<24x32xf32, #tpu.memory_space<vmem>>, vector<24x32xf32>
    %1 = arith.mulf %0, %0 : vector<24x32xf32>
    %cst = arith.constant dense<0.000000e+00> : vector<24xf32>
    %2 = vector.multi_reduction <add>, %1, %cst [1] : vector<24x32xf32> to vector<24xf32>
    %3 = vector.shape_cast %2 : vector<24xf32> to vector<24x1xf32>
    %cst_1 = arith.constant 1.000000e-16 : f32
    %4 = vector.broadcast %cst_1 : f32 to vector<24x1xf32>
    %5 = arith.maximumf %3, %4 : vector<24x1xf32>
    %6 = math.rsqrt %5 : vector<24x1xf32>
    %cst_2 = arith.constant 3.77964473 : f32
    %7 = vector.broadcast %cst_2 : f32 to vector<24x1xf32>
    %8 = arith.mulf %6, %7 : vector<24x1xf32>
    %9 = vector.broadcast %8 : vector<24x1xf32> to vector<24x32xf32>
    %10 = arith.mulf %0, %9 : vector<24x32xf32>
    %11 = arith.truncf %10 : vector<24x32xf32> to vector<24x32xbf16>
    %c0_3 = arith.constant 0 : index
    %c0_4 = arith.constant 0 : index
    %12 = vector.load %arg2[%c0_3, %c0_4] : memref<24x32xbf16, #tpu.memory_space<vmem>>, vector<24x32xbf16>
    tpu.vector_store %arg2[%c0_3, %c0_4], %11 {strides = array<i32>} : memref<24x32xbf16, #tpu.memory_space<vmem>>, vector<24x32xbf16>,
    return
  }
  func.func @transform_0(%arg0: i32) -> (i32, i32) {
    %c0_i32 = arith.constant 0 : i32
    %c0_i32_0 = arith.constant 0 : i32
    return %arg0, %c0_i32 : i32, i32
  }
  func.func @transform_1(%arg0: i32) -> (i32, i32) {
    %c0_i32 = arith.constant 0 : i32
    %c0_i32_0 = arith.constant 0 : i32
    return %arg0, %c0_i32 : i32, i32
  }
}

module attributes {stable_mosaic.version = 11 : i64} {
  func.func @_loss_rows_kernel(%arg0: i32, %arg1: memref<24x32xbf16, #tpu.memory_space<vmem>>, %arg2: memref<24x1xi32, #tpu.memory_space<vmem>>, %arg3: memref<1x24xi32, #tpu.memory_space<vmem>>, %arg4: memref<24x1xf32, #tpu.memory_space<vmem>>) attributes {dimension_semantics = [#tpu.dimension_semantics<parallel>], iteration_bounds = array<i64: 1>, scalar_prefetch = 0 : i64, scratch_operands = 0 : i64, tpu.core_type = #tpu.core_type<tc>, window_params = [{pipeline_mode = #tpu.pipeline_mode<synchronous>, transform_indices = @transform_0, window_bounds = array<i64: 24, 32>}, {transform_indices = @transform_1, window_bounds = array<i64: 24, 1>}, {pipeline_mode = #tpu.pipeline_mode<synchronous>, transform_indices = @transform_2, window_bounds = array<i64: 1, 24>}, {transform_indices = @transform_3, window_bounds = array<i64: 24, 1>}]} {
    %c24_i32 = arith.constant 24 : i32
    %0 = arith.muli %arg0, %c24_i32 : i32
    %1 = tpu.assume_multiple %0, 24 : i32
    %2 = arith.index_cast %1 : i32 to index
    %c0 = arith.constant 0 : index
    %3 = vector.load %arg1[%2, %c0] : memref<24x32xbf16, #tpu.memory_space<vmem>>, vector<24x32xbf16>
    %c0_0 = arith.constant 0 : index
    %c0_1 = arith.constant 0 : index
    %4 = vector.load %arg1[%c0_0, %c0_1] : memref<24x32xbf16, #tpu.memory_space<vmem>>, vector<24x32xbf16>
    %cst = arith.constant dense<0.000000e+00> : vector<24x24xf32>
    %5 = tpu.matmul %3, %4, %cst {dimension_numbers = #tpu.dot_dimension_numbers<[1], [1], [0], [0], [0, 0, 1, 0], [], []>} : vector<24x32xbf16>, vector<24x32xbf16>, vector<24x24xf32> -> vector<24x24xf32>
    %c0_2 = arith.constant 0 : index
    %c0_3 = arith.constant 0 : index
    %6 = vector.load %arg2[%c0_2, %c0_3] : memref<24x1xi32, #tpu.memory_space<vmem>>, vector<24x1xi32>
    %c0_4 = arith.constant 0 : index
    %c0_5 = arith.constant 0 : index
    %7 = vector.load %arg3[%c0_4, %c0_5] : memref<1x24xi32, #tpu.memory_space<vmem>>, vector<1x24xi32>
    %8 = vector.broadcast %6 : vector<24x1xi32> to vector<24x24xi32>
    %9 = vector.broadcast %7 : vector<1x24xi32> to vector<24x24xi32>
    %10 = arith.cmpi eq, %8, %9 : vector<24x24xi32>
    %11 = math.exp %5 : vector<24x24xf32>
    %cst_6 = arith.constant 0.000000e+00 : f32
    %12 = vector.broadcast %cst_6 : f32 to vector<24x24xf32>
    %13 = arith.select %10, %11, %12 : vector<24x24xi1>, vector<24x24xf32>
    %cst_7 = arith.constant dense<0.000000e+00> : vector<24xf32>
    %14 = vector.multi_reduction <add>, %13, %cst_7 [1] : vector<24x24xf32> to vector<24xf32>
    %15 = vector.shape_cast %14 : vector<24xf32> to vector<24x1xf32>
    %c0_8 = arith.constant 0 : index
    %c0_9 = arith.constant 0 : index
    %16 = vector.load %arg2[%c0_8, %c0_9] : memref<24x1xi32, #tpu.memory_space<vmem>>, vector<24x1xi32>
    %c-2147483648_i32 = arith.constant -2147483648 : i32
    %17 = vector.broadcast %c-2147483648_i32 : i32 to vector<24x1xi32>
    %18 = arith.cmpi ne, %16, %17 : vector<24x1xi32>
    %cst_10 = arith.constant 1.000000e+00 : f32
    %19 = vector.broadcast %cst_10 : f32 to vector<24x1xf32>
    %20 = arith.select %18, %15, %19 : vector<24x1xi1>, vector<24x1xf32>
    %21 = math.log %20 : vector<24x1xf32>
    %cst_11 = arith.constant 14.2857141 : f32
    %22 = vector.broadcast %cst_11 : f32 to vector<24x1xf32>
    %23 = arith.subf %22, %21 : vector<24x1xf32>
    %cst_12 = arith.constant 0.000000e+00 : f32
    %24 = vector.broadcast %cst_12 : f32 to vector<24x1xf32>
    %25 = arith.select %18, %23, %24 : vector<24x1xi1>, vector<24x1xf32>
    %c0_13 = arith.constant 0 : index
    %c0_14 = arith.constant 0 : index
    %26 = vector.load %arg4[%c0_13, %c0_14] : memref<24x1xf32, #tpu.memory_space<vmem>>, vector<24x1xf32>
    tpu.vector_store %arg4[%c0_13, %c0_14], %25 {strides = array<i32>} : memref<24x1xf32, #tpu.memory_space<vmem>>, vector<24x1xf32>,
    return
  }
  func.func @transform_0(%arg0: i32) -> (i32, i32) {
    %c0_i32 = arith.constant 0 : i32
    %c0_i32_0 = arith.constant 0 : i32
    %c0_i32_1 = arith.constant 0 : i32
    return %c0_i32, %c0_i32_0 : i32, i32
  }
  func.func @transform_1(%arg0: i32) -> (i32, i32) {
    %c0_i32 = arith.constant 0 : i32
    %c0_i32_0 = arith.constant 0 : i32
    return %arg0, %c0_i32 : i32, i32
  }
  func.func @transform_2(%arg0: i32) -> (i32, i32) {
    %c0_i32 = arith.constant 0 : i32
    %c0_i32_0 = arith.constant 0 : i32
    %c0_i32_1 = arith.constant 0 : i32
    return %c0_i32, %c0_i32_0 : i32, i32
  }
  func.func @transform_3(%arg0: i32) -> (i32, i32) {
    %c0_i32 = arith.constant 0 : i32
    %c0_i32_0 = arith.constant 0 : i32
    return %arg0, %c0_i32 : i32, i32
  }
}

</mosaic_0001>

<bundles_post_ra>
// kernel: custom_contrastive_loss.2
= control target key start
LH: loop header
LB: loop body
LE: loop exit
PB: predicated region body
PF: predicated region fallthrough
CT: control target
= control target key end

     0   :  { %vm14_vm0 = vcmask 261120   ;;  %vm49_vm1 = vcmask 257024   ;;  %s97_s0 = inlined_call_operand.vmem [shape: f32[24,32], index: 0, kind: input, shape index: {}]   ;;  %s98_s1 = inlined_call_operand.vmem [shape: bf16[24,32], index: 1, kind: output, shape index: {}]  }
   0x1   :  { %v8_v0 = vld [vmem:[%s97_s0] sm:$0xff]  ;;  %v10_v1 = vld [vmem:[%s97_s0 + $0x10] sm:$0xff]  ;;  %v9_v2 = vld [vmem:[%s97_s0 + $0x8] sm:$0xff] }
   0x2   :  { %v11_v3 = vmul.f32 %v8_v0, %v8_v0  ;;  %v13_v4 = vmul.f32 %v10_v1, %v10_v1  ;;  %v12_v5 = vmul.f32 %v9_v2, %v9_v2 }
   0x4   :  { %v15_v6 = vsel %vm14_vm0, %v11_v3, 0.0  ;;  %v21_v7 = vsel %vm14_vm0, %v13_v4, 0.0  ;;  %v18_v8 = vsel %vm14_vm0, %v12_v5, 0.0 }
   0x5   :  { %16 = vadd.xlane.f32.xlu0 %v15_v6  ;;  %22 = vadd.xlane.f32.xlu1 %v21_v7 }
   0x9   :  { %19 = vadd.xlane.f32.xlu0 %v18_v8 }
  0x8e   :  { %v17_v9 = vpop.xlane.xlu0 %16  ;;  %v23_v10 = vpop.xlane.xlu1 %22 }
  0x8f   :  { %v24_v11 = vmax.f32 %v17_v9, 1e-16  ;;  %v26_v12 = vmax.f32 %v23_v10, 1e-16 }
  0x91   :  { %63 = vrsqrt.f32 %v24_v11 }
  0x92   :  { %65 = vrsqrt.f32 %v26_v12  ;;  %v20_v13 = vpop.xlane.xlu0 %19 }
  0x93   :  { %v25_v14 = vmax.f32 %v20_v13, 1e-16 }
  0x95   :  { %67 = vrsqrt.f32 %v25_v14 }
  0x9e   :  { %v64_v15 = vpop.eup %63 }
  0x9f   :  { %v66_v16 = vpop.eup %65  ;;  %v30_v17 = vmul.f32 3.7796447, %v64_v15 }
  0xa0   :  { %v32_v18 = vmul.f32 3.7796447, %v66_v16 }
  0xa1   :  { %v33_v19 = vmul.f32 %v30_v17, %v8_v0 }
  0xa2   :  { %v68_v20 = vpop.eup %67  ;;  %v35_v21 = vmul.f32 %v32_v18, %v10_v1 }
  0xa3   :  { %v60_v22 = vpack.c.bf16 %v33_v19, %v33_v19  ;;  %v31_v23 = vmul.f32 3.7796447, %v68_v20 }
  0xa4   :  { %v62_v24 = vpack.c.bf16 %v35_v21, %v35_v21 }
  0xa5   :  { %50 = vst.msk [vmem:[%s98_s1] sm:$0xf] %vm49_vm1, %v60_v22  ;;  %v34_v25 = vmul.f32 %v31_v23, %v9_v2 }
  0xa6   :  { %52 = vst.msk [vmem:[%s98_s1 + $0x8] sm:$0xf] %vm49_vm1, %v62_v24 }
  0xa7   :  { %v61_v26 = vpack.c.bf16 %v34_v25, %v34_v25 }
  0xa9   :  { %51 = vst.msk [vmem:[%s98_s1 + $0x4] sm:$0xf] %vm49_vm1, %v61_v26 }

// kernel: custom_contrastive_loss.3
= control target key start
LH: loop header
LB: loop body
LE: loop exit
PB: predicated region body
PF: predicated region fallthrough
CT: control target
= control target key end

     0   :  { %vm42_vm0 = vcmask 261120   ;;  %v210_v1 = vmov 0   ;;  %vm132_vm2 = vcmask 195584   ;;  %vm160_vm8 = vcmask 7168   ;;  %s282_s0 = inlined_call_operand.vmem [shape: bf16[24,32], index: 0, kind: input, shape index: {}]   ;;  %s283_s1 = inlined_call_operand.vmem [shape: s32[24,1], index: 1, kind: input, shape index: {}]   ;;  %s284_s2 = inlined_call_operand.vmem [shape: s32[1,24], index: 2, kind: input, shape index: {}]   ;;  %s285_s3 = inlined_call_operand.vmem [shape: f32[24,1], index: 3, kind: output, shape index: {}]  }
   0x1   :  { %v194_v0 = vld [vmem:[%s282_s0 + $0x8] ss:$0 sps:$4 sm:$0xff]   ;;  %192 = vset.pattern.permute.xlu0 %v210_v1  ;;  %193 = vset.pattern.permute.xlu1 %v210_v1  ;;  %v195_v2 = vld [vmem:[%s282_s0] sm:$0xff]   ;;  %v248_v6 = vld [vmem:[%s283_s1 + $0x10] sm:$0xff] }
   0x2   :  { %189 = vmatprep.subr.msk.bf16.mxu0 %vm42_vm0, %v194_v0  ;;  %v53_v3 = vsel %vm42_vm0, %v194_v0, 0  ;;  %v196_v4 = vld [vmem:[%s282_s0] sm:$0xff]   ;;  %114 = vperm.xlu1 %193, %v248_v6   ;;  %v104_v7 = vld [vmem:[%s283_s1 + $0x8] sm:$0xff]  ;;  %v50_v8 = vsel %vm42_vm0, %v195_v2, 0  ;;  %vm144_vm7 = vcmp.ne.s32.totalorder %v248_v6, 2147483648 }
   0x3   :  { %182 = vmatpush3.bf16.xpose.msra.mxu0 %v53_v3  ;;  %v103_v5 = vld [vmem:[%s283_s1] sm:$0xff]  ;;  %185 = vmatprep.mubr.msk.bf16.mxu0 %vm42_vm0, %v196_v4  ;;  %v197_v9 = vld [vmem:[%s282_s0 + $0x8] ss:$0 sps:$4 sm:$0xff]   ;;  %vm143_vm6 = vcmp.ne.s32.totalorder %v104_v7, 2147483648 }
   0x4   :  { %190 = vmatprep.subr.msk.bf16.mxu0 %vm42_vm0, %v195_v2  ;;  %108 = vperm.xlu0 %192, %v103_v5   ;;  %v176_v18 = vld [vmem:[%s284_s2] ss:$0 sm:$0xff]  ;;  %vm142_vm5 = vcmp.ne.s32.totalorder %v103_v5, 2147483648 }
   0x8   :  { %111 = vperm.xlu0 %192, %v104_v7  }
   0xb   :  { %184 = vmatpush3.bf16.xpose.msra.mxu0 %v50_v8 }
  0x12   :  { %186 = vmatmul.mubr.msk.bf16.vlgmr.msra.gmra.mxu0 %vm42_vm0, %v197_v9 }
  0x7d   :  { %v115_v20 = vpop.permute.xlu1 %114 }
  0x7e   :  { %vm122_vm3 = vcmp.eq.s32.totalorder %v115_v20, %v176_v18 }
  0x7f   :  { %v109_v17 = vpop.permute.xlu0 %108 }
  0x80   :  { %vm120_vm1 = vcmp.eq.s32.totalorder %v109_v17, %v176_v18 }
  0x83   :  { %v112_v21 = vpop.permute.xlu0 %111 }
  0x84   :  { %vm121_vm4 = vcmp.eq.s32.totalorder %v112_v21, %v176_v18 }
  0xd2   :  { %v187_v10 = vpop.f32.mrf.mxu0 }
  0xd3   :  { %v127_v13 = vmul.f32 1.442695, %v187_v10 }
  0xd4   :  { %v89_v11 = vpop.f32.mrf.mxu0 }
  0xd5   :  { %v123_v12 = vmul.f32 1.442695, %v89_v11 }
  0xd6   :  { %v188_v14 = vpop.f32.mrf.mxu0 }
  0xd7   :  { %198 = vpow2.f32 %v123_v12 }
  0xd8   :  { %v92_v15 = vpop.f32.mrf.mxu0  ;;  %200 = vpow2.f32 %v127_v13 }
  0xd9   :  { %v125_v16 = vmul.f32 1.442695, %v92_v15 }
  0xdb   :  { %202 = vpow2.f32 %v125_v16 }
  0xe4   :  { %v199_v19 = vpop.eup %198 }
  0xe5   :  { %v129_v22 = vsel %vm120_vm1, %v199_v19, 0.0  ;;  %v201_v24 = vpop.eup %200 }
  0xe6   :  { %v133_v23 = vsel %vm132_vm2, %v129_v22, 0.0  ;;  %v131_v28 = vsel %vm122_vm3, %v201_v24, 0.0 }
  0xe7   :  { %134 = vadd.xlane.f32.xlu1 %v133_v23  ;;  %v139_v29 = vsel %vm132_vm2, %v131_v28, 0.0 }
  0xe8   :  { %v203_v25 = vpop.eup %202 }
  0xe9   :  { %v130_v26 = vsel %vm121_vm4, %v203_v25, 0.0 }
  0xea   :  { %v136_v27 = vsel %vm132_vm2, %v130_v26, 0.0 }
  0xeb   :  { %137 = vadd.xlane.f32.xlu0 %v136_v27 }
  0xef   :  { %140 = vadd.xlane.f32.xlu0 %v139_v29 }
 0x170   :  { %v135_v30 = vpop.xlane.xlu1 %134 }
 0x171   :  { %v145_v31 = vsel %vm142_vm5, %v135_v30, 1.0 }
 0x172   :  { %204 = vlog2.f32 %v145_v31 }
 0x174   :  { %v138_v32 = vpop.xlane.xlu0 %137 }
 0x175   :  { %v146_v33 = vsel %vm143_vm6, %v138_v32, 1.0 }
 0x176   :  { %206 = vlog2.f32 %v146_v33 }
 0x178   :  { %v141_v34 = vpop.xlane.xlu0 %140 }
 0x179   :  { %v147_v35 = vsel %vm144_vm7, %v141_v34, 1.0 }
 0x17a   :  { %208 = vlog2.f32 %v147_v35 }
 0x17f   :  { %v205_v36 = vpop.eup %204 }
 0x180   :  { %v149_v37 = vmul.f32 0.6931472, %v205_v36 }
 0x182   :  { %v154_v38 = vsub.f32 14.285714, %v149_v37 }
 0x183   :  { %v207_v39 = vpop.eup %206 }
 0x184   :  { %v157_v40 = vsel %vm142_vm5, %v154_v38, 0.0  ;;  %v151_v41 = vmul.f32 0.6931472, %v207_v39 }
 0x185   :  { %161 = vst.msk [vmem:[%s285_s3] sm:$0xff] %vm160_vm8, %v157_v40 }
 0x186   :  { %v155_v42 = vsub.f32 14.285714, %v151_v41 }
 0x187   :  { %v209_v43 = vpop.eup %208 }
 0x188   :  { %v158_v44 = vsel %vm143_vm6, %v155_v42, 0.0  ;;  %v153_v45 = vmul.f32 0.6931472, %v209_v43 }
 0x189   :  { %162 = vst.msk [vmem:[%s285_s3 + $0x8] sm:$0xff] %vm160_vm8, %v158_v44 }
 0x18a   :  { %v156_v46 = vsub.f32 14.285714, %v153_v45 }
 0x18c   :  { %v159_v47 = vsel %vm144_vm7, %v156_v46, 0.0 }
 0x18d   :  { %163 = vst.msk [vmem:[%s285_s3 + $0x10] sm:$0xff] %vm160_vm8, %v159_v47 }

</bundles_post_ra>
